<compile_context>
chip_gen: v7x
topology: tpu7x:2x2x1
jax: 0.10.0
libtpu: 0.0.40
codegen_flags: <defaults>
</compile_context>

<pallas_src>
import functools

import jax
import jax.numpy as jnp
import numpy as np
from jax.experimental import pallas as pl
from jax.experimental.pallas import tpu as pltpu


def _round_up(a, b):
    return (a + b - 1) // b * b


def _ensemble_kernel(x_ref, w_ref, coef_ref, bias_ref, o_ref):
    k = pl.program_id(2)

    # Fold the per-model ensemble coefficients (expanded per K column) into the
    # x operand, then a single MXU contraction over this K tile.
    xs = coef_ref[...] * x_ref[...]                      # (1, tk) * (tb, tk)
    partial = jnp.dot(xs, w_ref[...], preferred_element_type=jnp.float32)

    @pl.when(k == 0)
    def _():
        # Combined bias (sum_m coef_m * b_m + stacking bias), added exactly once.
        o_ref[...] = partial + bias_ref[...]

    @pl.when(k > 0)
    def _():
        o_ref[...] = o_ref[...] + partial


@functools.partial(jax.jit, static_argnames=("tb", "to", "tk"))
def ensemble_forward(x, w_stack, b_stack, coef, stack_bias, *,
                     tb=256, to=256, tk=512):
    """x: [B, D], w_stack: [M, D, O], b_stack: [M, O], coef: [M], stack_bias: [1]."""
    B, D = x.shape
    M, _, O = w_stack.shape
    K = M * D

    # Tile sizes: multiples of (8, 128), clipped to the (padded) problem size.
    tb = min(tb, _round_up(B, 8))
    to = min(to, _round_up(O, 128))
    tk = min(tk, _round_up(K, 128))
    B_pad = _round_up(B, tb)
    O_pad = _round_up(O, to)
    K_pad = _round_up(K, tk)

    f32 = jnp.float32
    # x repeated as M D-slabs along the contraction axis -> K = M*D.
    x_big = jnp.tile(x.astype(f32), (1, M))
    x_big = jnp.pad(x_big, ((0, B_pad - B), (0, K_pad - K)))
    # Stacked per-model weights as one [K, O] slab (zero-padded -> no effect).
    w_big = jnp.pad(w_stack.astype(f32).reshape(K, O),
                    ((0, K_pad - K), (0, O_pad - O)))
    # Per-K-column ensemble coefficient (coef_m repeated D times).
    coef_cols = jnp.pad(jnp.repeat(coef.astype(f32), D), (0, K_pad - K))
    coef_cols = coef_cols.reshape(1, K_pad)
    # Combined bias: sum_m coef_m * b_m + stacking bias (tiny O-vector).
    b_comb = coef.astype(f32) @ b_stack.astype(f32) + stack_bias.astype(f32)
    b_comb = jnp.pad(b_comb, (0, O_pad - O)).reshape(1, O_pad)

    grid = (B_pad // tb, O_pad // to, K_pad // tk)
    out = pl.pallas_call(
        _ensemble_kernel,
        out_shape=jax.ShapeDtypeStruct((B_pad, O_pad), f32),
        grid=grid,
        in_specs=[
            pl.BlockSpec((tb, tk), lambda i, j, k: (i, k)),   # x_big
            pl.BlockSpec((tk, to), lambda i, j, k: (k, j)),   # w_big
            pl.BlockSpec((1, tk), lambda i, j, k: (0, k)),    # coef per column
            pl.BlockSpec((1, to), lambda i, j, k: (0, j)),    # combined bias
        ],
        out_specs=pl.BlockSpec((tb, to), lambda i, j, k: (i, j)),
        compiler_params=pltpu.CompilerParams(
            dimension_semantics=("parallel", "parallel", "arbitrary")),
    )(x_big, w_big, coef_cols, b_comb)
    return out[:B, :O].astype(x.dtype)


def make_coefficients(ensemble_type, num_models, weights=None,
                      stacking_w=None, stacking_b=None):
    """Fold the ensemble strategy into per-model coefficients + scalar bias."""
    if ensemble_type == "average":
        coef = jnp.full((num_models,), 1.0 / num_models, jnp.float32)
        sbias = jnp.zeros((1,), jnp.float32)
    elif ensemble_type == "weighted":
        if weights is None:
            weights = [1.0 / num_models] * num_models
        w = jnp.asarray(weights, jnp.float32)
        coef = w / jnp.sum(w)
        sbias = jnp.zeros((1,), jnp.float32)
    elif ensemble_type == "stacking":
        # nn.Linear(M, 1): y = stacked_preds @ W.T + b, squeezed on last axis
        coef = stacking_w.reshape(num_models).astype(jnp.float32)
        sbias = stacking_b.reshape(1).astype(jnp.float32)
    else:
        raise ValueError(f"Unsupported ensemble type: {ensemble_type}")
    return coef, sbias


def reference_forward(x, w_stack, b_stack, coef, stack_bias):
    preds = jnp.einsum("bd,mdo->mbo", x, w_stack) + b_stack[:, None, :]
    return jnp.einsum("m,mbo->bo", coef, preds) + stack_bias[0]


if __name__ == "__main__":
    key = jax.random.PRNGKey(0)
    B, D, O, M = 8, 32, 16, 3  # batch, in-features, out-features, #models

    k = jax.random.split(key, 6)
    x = jax.random.normal(k[0], (B, D), jnp.float32)
    w_stack = jax.random.normal(k[1], (M, D, O), jnp.float32) * 0.1
    b_stack = jax.random.normal(k[2], (M, O), jnp.float32) * 0.01
    user_weights = [0.5, 0.3, 0.2]
    stacking_w = jax.random.normal(k[3], (1, M), jnp.float32) * 0.5
    stacking_b = jax.random.normal(k[4], (1,), jnp.float32) * 0.1

    ok = True
    for etype in ("average", "weighted", "stacking"):
        coef, sbias = make_coefficients(
            etype, M,
            weights=user_weights if etype == "weighted" else None,
            stacking_w=stacking_w, stacking_b=stacking_b)
        out = ensemble_forward(x, w_stack, b_stack, coef, sbias)
        out = jax.block_until_ready(out)
        ref = reference_forward(x, w_stack, b_stack, coef, sbias)
        ok &= bool(np.allclose(np.asarray(out), np.asarray(ref),
                               rtol=1e-4, atol=1e-4))

    if ok:
        print("KERNEL_OK")
    else:
        print("KERNEL_MISMATCH")
</pallas_src>

<mosaic_0001>
module attributes {stable_mosaic.version = 11 : i64} {
  func.func @_ensemble_kernel(%arg0: i32, %arg1: i32, %arg2: i32, %arg3: memref<8x128xf32, #tpu.memory_space<vmem>>, %arg4: memref<128x128xf32, #tpu.memory_space<vmem>>, %arg5: memref<1x128xf32, #tpu.memory_space<vmem>>, %arg6: memref<1x128xf32, #tpu.memory_space<vmem>>, %arg7: memref<8x128xf32, #tpu.memory_space<vmem>>) attributes {dimension_semantics = [#tpu.dimension_semantics<parallel>, #tpu.dimension_semantics<parallel>, #tpu.dimension_semantics<arbitrary>], iteration_bounds = array<i64: 1, 1, 1>, scalar_prefetch = 0 : i64, scratch_operands = 0 : i64, tpu.core_type = #tpu.core_type<tc>, window_params = [{transform_indices = @transform_0, window_bounds = array<i64: 8, 128>}, {transform_indices = @transform_1, window_bounds = array<i64: 128, 128>}, {transform_indices = @transform_2, window_bounds = array<i64: 1, 128>}, {transform_indices = @transform_3, window_bounds = array<i64: 1, 128>}, {transform_indices = @transform_4, window_bounds = array<i64: 8, 128>}]} {
    %c0 = arith.constant 0 : index
    %c0_0 = arith.constant 0 : index
    %0 = vector.load %arg5[%c0, %c0_0] : memref<1x128xf32, #tpu.memory_space<vmem>>, vector<1x128xf32>
    %c0_1 = arith.constant 0 : index
    %c0_2 = arith.constant 0 : index
    %1 = vector.load %arg3[%c0_1, %c0_2] : memref<8x128xf32, #tpu.memory_space<vmem>>, vector<8x128xf32>
    %2 = vector.broadcast %0 : vector<1x128xf32> to vector<8x128xf32>
    %3 = arith.mulf %2, %1 : vector<8x128xf32>
    %c0_3 = arith.constant 0 : index
    %c0_4 = arith.constant 0 : index
    %4 = vector.load %arg4[%c0_3, %c0_4] : memref<128x128xf32, #tpu.memory_space<vmem>>, vector<128x128xf32>
    %cst = arith.constant dense<0.000000e+00> : vector<8x128xf32>
    %5 = tpu.matmul %3, %4, %cst {dimension_numbers = #tpu.dot_dimension_numbers<[1], [0], [0], [1], [0, 0, 1, 1], [], []>} : vector<8x128xf32>, vector<128x128xf32>, vector<8x128xf32> -> vector<8x128xf32>
    %c0_i32 = arith.constant 0 : i32
    %6 = arith.cmpi eq, %arg2, %c0_i32 : i32
    %7 = arith.extui %6 : i1 to i32
    %c0_i32_5 = arith.constant 0 : i32
    %8 = arith.cmpi ne, %7, %c0_i32_5 : i32
    scf.if %8 {
      %c0_8 = arith.constant 0 : index
      %c0_9 = arith.constant 0 : index
      %12 = vector.load %arg6[%c0_8, %c0_9] : memref<1x128xf32, #tpu.memory_space<vmem>>, vector<1x128xf32>
      %13 = vector.broadcast %12 : vector<1x128xf32> to vector<8x128xf32>
      %14 = arith.addf %5, %13 : vector<8x128xf32>
      %c0_10 = arith.constant 0 : index
      %c0_11 = arith.constant 0 : index
      %15 = vector.load %arg7[%c0_10, %c0_11] : memref<8x128xf32, #tpu.memory_space<vmem>>, vector<8x128xf32>
      tpu.vector_store %arg7[%c0_10, %c0_11], %14 {strides = array<i32>} : memref<8x128xf32, #tpu.memory_space<vmem>>, vector<8x128xf32>,
    } else {
    }
    %c0_i32_6 = arith.constant 0 : i32
    %9 = arith.cmpi sgt, %arg2, %c0_i32_6 : i32
    %10 = arith.extui %9 : i1 to i32
    %c0_i32_7 = arith.constant 0 : i32
    %11 = arith.cmpi ne, %10, %c0_i32_7 : i32
    scf.if %11 {
      %c0_8 = arith.constant 0 : index
      %c0_9 = arith.constant 0 : index
      %12 = vector.load %arg7[%c0_8, %c0_9] : memref<8x128xf32, #tpu.memory_space<vmem>>, vector<8x128xf32>
      %13 = arith.addf %12, %5 : vector<8x128xf32>
      %c0_10 = arith.constant 0 : index
      %c0_11 = arith.constant 0 : index
      %14 = vector.load %arg7[%c0_10, %c0_11] : memref<8x128xf32, #tpu.memory_space<vmem>>, vector<8x128xf32>
      tpu.vector_store %arg7[%c0_10, %c0_11], %13 {strides = array<i32>} : memref<8x128xf32, #tpu.memory_space<vmem>>, vector<8x128xf32>,
    } else {
    }
    return
  }
  func.func @transform_0(%arg0: i32, %arg1: i32, %arg2: i32) -> (i32, i32) {
    %c0_i32 = arith.constant 0 : i32
    return %arg0, %arg2 : i32, i32
  }
  func.func @transform_1(%arg0: i32, %arg1: i32, %arg2: i32) -> (i32, i32) {
    %c0_i32 = arith.constant 0 : i32
    return %arg2, %arg1 : i32, i32
  }
  func.func @transform_2(%arg0: i32, %arg1: i32, %arg2: i32) -> (i32, i32) {
    %c0_i32 = arith.constant 0 : i32
    %c0_i32_0 = arith.constant 0 : i32
    return %c0_i32, %arg2 : i32, i32
  }
  func.func @transform_3(%arg0: i32, %arg1: i32, %arg2: i32) -> (i32, i32) {
    %c0_i32 = arith.constant 0 : i32
    %c0_i32_0 = arith.constant 0 : i32
    return %c0_i32, %arg1 : i32, i32
  }
  func.func @transform_4(%arg0: i32, %arg1: i32, %arg2: i32) -> (i32, i32) {
    %c0_i32 = arith.constant 0 : i32
    return %arg0, %arg1 : i32, i32
  }
}

</mosaic_0001>

<bundles_post_ra>
// kernel: tile.9
= control target key start
LH: loop header
LB: loop body
LE: loop exit
PB: predicated region body
PF: predicated region fallthrough
CT: control target
= control target key end

     0   :  { %vm42_vm0 = vcmask 1047556   ;;  %vm44_vm1 = vcmask 261120   ;;  %s82_s24 = smov 32   ;;  %vm54_vm2 = vcmask 785920   ;;  %vm64_vm3 = vcmask 523520   ;;  %s126_s0 = inlined_call_operand.vmem [shape: f32[8,3,32], index: 0, kind: input, shape index: {}]   ;;  %s127_s1 = inlined_call_operand.vmem [shape: f32[8,96], index: 1, kind: output, shape index: {}]  }
   0x1   :  { %v72_v0 = vld [vmem:[%s126_s0 + $0x1c] sm:$0xf]  ;;  %v73_v1 = vld [vmem:[%s126_s0 + $0x18] sm:$0xf]  ;;  %v74_v2 = vld [vmem:[%s126_s0 + $0x14] sm:$0xf] }
   0x2   :  { %8 = vst [vmem:[#allocation0 + $0x38] sm:$0xf] %v72_v0  ;;  %13 = vst [vmem:[#allocation0 + $0x30] sm:$0xf] %v73_v1  ;;  %v75_v3 = vld [vmem:[%s126_s0 + $0x10] sm:$0xf] }
   0x3   :  { %18 = vst [vmem:[#allocation0 + $0x28] sm:$0xf] %v74_v2  ;;  %v76_v4 = vld [vmem:[%s126_s0 + $0xc] sm:$0xf]  ;;  %v77_v5 = vld [vmem:[%s126_s0 + $0x8] sm:$0xf] }
   0x4   :  { %23 = vst [vmem:[#allocation0 + $0x20] sm:$0xf] %v75_v3  ;;  %28 = vst [vmem:[#allocation0 + $0x18] sm:$0xf] %v76_v4  ;;  %v78_v6 = vld [vmem:[%s126_s0 + $0x4] sm:$0xf] }
   0x5   :  { %33 = vst [vmem:[#allocation0 + $0x10] sm:$0xf] %v77_v5  ;;  %v38_v7 = vld [vmem:[%s126_s0] sm:$0xf]  ;;  %37 = vst [vmem:[#allocation0 + $0x8] sm:$0xf] %v78_v6 }
   0x6   :  { %39 = vst [vmem:[#allocation0] sm:$0xf] %v38_v7  ;;  %s81_s0 = smov 64  }
   0xb   :  { %v49_v8 = vld [vmem:[#allocation0 + $0x2] ss:$8 sm:$0xf0]   ;;  %v41_v9 = vld [vmem:[#allocation0] ss:$8 sm:$0xf0]  }
   0xc   :  { %v59_v15 = vld [vmem:[#allocation0 + $0x1] ss:$8 sm:$0xf0]  }
   0xd   :  { %v40_v10 = vld [vmem:[#allocation0] ss:$8 sm:$0xf]   ;;  %v47_v11 = vld [vmem:[#allocation0 + $0x2] ss:$8 sm:$0xf]  }
   0xe   :  { %v51_v12 = vsel %vm42_vm0, %v49_v8, %v47_v11  ;;  %v43_v13 = vsel %vm42_vm0, %v41_v9, %v40_v10  ;;  %v57_v14 = vld [vmem:[#allocation0 + $0x1] ss:$8 sm:$0xf]  }
   0xf   :  { %52 = vrot.lane.b32.xlu0 %v51_v12, %s81_s0  ;;  %45 = vst.msk [vmem:[%s127_s1] sm:$0xff] %vm44_vm1, %v43_v13   ;;  %v61_v16 = vsel %vm42_vm0, %v59_v15, %v57_v14 }
  0x13   :  { %62 = vrot.lane.b32.xlu0 %v61_v16, %s82_s24 }
  0x81   :  { %v53_v17 = vpop.permute.xlu0 %52  }
  0x82   :  { %55 = vst.msk [vmem:[%s127_s1] sm:$0xff] %vm54_vm2, %v53_v17  }
  0x85   :  { %v63_v18 = vpop.permute.xlu0 %62  }
  0x86   :  { %65 = vst.msk [vmem:[%s127_s1] sm:$0xff] %vm64_vm3, %v63_v18  }

// kernel: ensemble_forward.1
= control target key start
LH: loop header
LB: loop body
LE: loop exit
PB: predicated region body
PF: predicated region fallthrough
CT: control target
= control target key end

     0   :  { %v253_v3 = vmov 0.0|0.0   ;;  %vm254_vm0 = vmmov 0   ;;  %v255_v6 = vmov 0.0   ;;  %s351_s0 = inlined_call_operand.vmem [shape: f32[8,128], index: 0, kind: input, shape index: {}]   ;;  %s352_s1 = inlined_call_operand.vmem [shape: f32[128,128], index: 1, kind: input, shape index: {}]   ;;  %s353_s2 = inlined_call_operand.vmem [shape: f32[1,128], index: 2, kind: input, shape index: {}]   ;;  %s354_s3 = inlined_call_operand.vmem [shape: f32[1,128], index: 3, kind: input, shape index: {}]   ;;  %s355_s4 = inlined_call_operand.hbm [shape: f32[8,128], index: 4, kind: output, shape index: {}]  }
   0x1   :  { %v27_v0 = vld [vmem:[%s352_s1] sm:$0xff]  ;;  %v28_v1 = vld [vmem:[%s352_s1 + $0x8] sm:$0xff]  ;;  %v29_v2 = vld [vmem:[%s352_s1 + $0x10] sm:$0xff]  ;;  %201 = vmatprep.subr.bf16.mxu0 %v253_v3  ;;  %198 = vmatprep.mubr.msk.f32.mxu0 %vm254_vm0, %v255_v6 }
   0x2   :  { %v202_v4 = vpack.c.bf16 %v28_v1, %v27_v0  ;;  %v30_v5 = vld [vmem:[%s352_s1 + $0x18] sm:$0xff]  ;;  %v31_v8 = vld [vmem:[%s352_s1 + $0x20] sm:$0xff]  ;;  %v32_v9 = vld [vmem:[%s352_s1 + $0x28] sm:$0xff] }
   0x3   :  { %v205_v7 = vpack.c.bf16 %v30_v5, %v29_v2 }
   0x4   :  { %203 = vmatpush3.bf16.msra.mxu0 %v202_v4 }
   0x5   :  { %204 = vmatprep.subr.bf16.mxu0 %v253_v3 }
   0x6   :  { %9 = vsyncpa [#allocation3], 0  ;;  %v208_v10 = vpack.c.bf16 %v32_v9, %v31_v8  ;;  %v33_v11 = vld [vmem:[%s352_s1 + $0x30] sm:$0xff]  ;;  %v34_v12 = vld [vmem:[%s352_s1 + $0x38] sm:$0xff]  ;;  %s256_s27 = smov [#allocation2]  }
   0x7   :  { %v211_v13 = vpack.c.bf16 %v34_v12, %v33_v11  ;;  %v35_v14 = vld [vmem:[%s352_s1 + $0x40] sm:$0xff]  ;;  %v36_v15 = vld [vmem:[%s352_s1 + $0x48] sm:$0xff]  ;;  %v37_v17 = vld [vmem:[%s352_s1 + $0x50] sm:$0xff] }
   0x8   :  { %206 = vmatpush3.bf16.msra.mxu0 %v205_v7  ;;  %v214_v16 = vpack.c.bf16 %v36_v15, %v35_v14  ;;  %v38_v18 = vld [vmem:[%s352_s1 + $0x58] sm:$0xff]  ;;  %v39_v20 = vld [vmem:[%s352_s1 + $0x60] sm:$0xff]  ;;  %v40_v21 = vld [vmem:[%s352_s1 + $0x68] sm:$0xff] }
   0x9   :  { %207 = vmatprep.subr.bf16.mxu0 %v253_v3  ;;  %v217_v19 = vpack.c.bf16 %v38_v18, %v37_v17  ;;  %v220_v22 = vpack.c.bf16 %v40_v21, %v39_v20  ;;  %v41_v23 = vld [vmem:[%s352_s1 + $0x70] sm:$0xff]  ;;  %v42_v24 = vld [vmem:[%s352_s1 + $0x78] sm:$0xff]  ;;  %v147_v26 = vld [vmem:[%s353_s2] ss:$0 sm:$0xff]  ;;  %s139_s1 = sshll.u32 %s256_s27, 4  ;;  %s140_s1 = int_to_ptr.vmem [resolvable:$true] %s139_s1 }
   0xa   :  { %v223_v25 = vpack.c.bf16 %v42_v24, %v41_v23  ;;  %v19_v27 = vld [vmem:[%s351_s0] sm:$0xff]  ;;  %s229_s2 = scalar_lea.vmem %s140_s1, 128  ;;  %p234_p1 = scmp.lt.s32.totalorder %s140_s1, %s140_s1 }
   0xb   :  { %v26_v28 = vmul.f32 %v147_v26, %v19_v27  ;;  %v148_v29 = vld [vmem:[%s354_s3] ss:$0 sm:$0xff]  ;;  %p230_p0 = scmp.ne.s32.totalorder %s140_s1, %s229_s2  ;;  %p235_p2 = scmp.lt.s32.totalorder %s229_s2, %s229_s2 }
   0xc   :  { %209 = vmatpush3.bf16.msra.mxu0 %v208_v10 }
   0xd   :  { %210 = vmatprep.subr.bf16.mxu0 %v253_v3  ;;  %p236_p3 = por %p235_p2, %p234_p1 }
   0xf   :  { %p237_p4 = pnand %p236_p3, %p230_p0 }
  0x10   :  { %212 = vmatpush3.bf16.msra.mxu0 %v211_v13 }
  0x11   :  { %213 = vmatprep.subr.bf16.mxu0 %v253_v3 }
  0x14   :  { %215 = vmatpush3.bf16.msra.mxu0 %v214_v16 }
  0x15   :  { %216 = vmatprep.subr.bf16.mxu0 %v253_v3 }
  0x18   :  { %218 = vmatpush3.bf16.msra.mxu0 %v217_v19 }
  0x19   :  { %219 = vmatprep.subr.bf16.mxu0 %v253_v3 }
  0x1c   :  { %221 = vmatpush3.bf16.msra.mxu0 %v220_v22 }
  0x1d   :  { %222 = vmatprep.subr.bf16.mxu0 %v253_v3 }
  0x20   :  { %224 = vmatpush3.bf16.msra.mxu0 %v223_v25 }
  0x23   :  { %199 = vmatmul.mubr.f32.vlgmr.msra.gmra.mrb[0].mxu0 %v26_v28 }
  0xf6   :  { %v109_v30 = vpop.f32.mrb[0].mxu0 }
  0xf7   :  { %v124_v31 = vadd.f32 %v148_v29, %v109_v30  ;;  %v200_v32 = vpop.f32.mrb[1].mxu0 }
  0xf9   :  { %125 = vst [vmem:[#allocation2] sm:$0xff] %v124_v31 }
  0xfa   :  { %240 = shalt.err (!%p237_p4)
}
  0xfb   :  { %s241_s29 = scalar_lea.hbm %s355_s4, 128 }
  0xfc   :  { %p242_p5 = scmp.ne.s32.totalorder %s355_s4, %s241_s29  ;;  %p245_p6 = scmp.lt.u32.totalorder %s241_s29, %s355_s4 }
  0xfe   :  { %p247_p7 = pnand %p245_p6, %p242_p5 }
 0x100   :  { %250 = shalt.err (!%p247_p7)
}
 0x101   :  { %142 = dma.vmem_to_hbm [thread:$0]  %s140_s1, 128, %s355_s4, [#allocation3]  }
 0x102   :  { %251 = dma.done.wait [#allocation3], 128  }
 0x103   :  { %252 = vsyncadd [#allocation3], 4294967168 }
 0x104   :  { %146 = vsyncpa [#allocation3], 1 }

</bundles_post_ra>
